<compile_context>
chip_gen: v6e
topology: v6e:2x2x1
jax: 0.10.0
libtpu: 0.0.40
codegen_flags: <defaults>
</compile_context>

<pallas_src>
import functools

import jax
import jax.numpy as jnp
import numpy as np
from jax import lax
from jax.experimental import pallas as pl
from jax.experimental.pallas import tpu as pltpu


def _round_up(n, m):
    return ((n + m - 1) // m) * m


def _mlp3_kernel(x_ref, w1_ref, w2_ref, b1_ref, b2_ref, w3t_ref, b3_ref, o_ref):
    # x_ref:  (TB, F)   TB rows of the flattened input (batch on sublanes here)
    # w1_ref: (H, F)    fc1 weight, native torch (out, in) layout
    # w2_ref: (H, H)    fc2 weight
    # b1_ref: (H, 1)    fc1 bias      b2_ref: (H, 1) fc2 bias
    # w3t_ref:(H, 1)    fc3 weight transposed      b3_ref: (1, 1) fc3 bias
    # o_ref:  (1, TB)   lane-dense output slab for this batch tile
    x = x_ref[...]
    w1 = w1_ref[...]
    w2 = w2_ref[...]
    b1 = b1_ref[...]
    b2 = b2_ref[...]
    w3t = w3t_ref[...]
    b3 = b3_ref[...]

    # Layer 1: (H, F) x (TB, F)^T -> (H, TB); batch lands on lanes from here on.
    nt = (((1,), (1,)), ((), ()))
    h1 = lax.dot_general(w1, x, nt, preferred_element_type=jnp.float32)
    h1 = jnp.maximum(h1 + b1, 0.0)

    # Layer 2: (H, H) x (H, TB) -> (H, TB)
    nn_dims = (((1,), (0,)), ((), ()))
    h2 = lax.dot_general(w2, h1, nn_dims, preferred_element_type=jnp.float32)
    h2 = jnp.maximum(h2 + b2, 0.0)

    # Layer 3: (1, H) @ (H, TB) as broadcast-multiply + sublane reduction (XLU slot;
    # review: neutral at these sizes -- the kernel is DMA/step-overhead bound).
    out = jnp.sum(h2 * w3t, axis=0, keepdims=True) + b3          # (1, TB)
    o_ref[...] = out.astype(o_ref.dtype)


def _choose_tile(B, tb_cap):
    """Pad B to a multiple of 128, then pick TB (a 128-multiple) dividing B_pad."""
    B_pad = _round_up(max(B, 1), 128)
    TB = min(_round_up(min(tb_cap, B_pad), 128), B_pad)
    TB = max(128, (TB // 128) * 128)
    while B_pad % TB != 0:          # shrink to the largest 128-multiple divisor
        TB -= 128
    return B_pad, TB


def layer3fc_forward(x, params, *, tb=1024):
    """x: (B, *feature_dims). params: torch-layout dict w1,b1,w2,b2,w3,b3."""
    B = x.shape[0]
    x2d = x.reshape(B, -1).astype(jnp.float32)        # flatten(1)
    F = x2d.shape[1]
    H = params["w1"].shape[0]

    B_pad, TB = _choose_tile(B, tb)
    if B_pad != B:
        x2d = jnp.pad(x2d, ((0, B_pad - B), (0, 0)))
    ntiles = B_pad // TB

    # Separate, whole-tile param operands (2-D so the blocks equal the full arrays).
    w1 = params["w1"].astype(jnp.float32)                          # (H, F)
    w2 = params["w2"].astype(jnp.float32)                          # (H, H)
    b1 = params["b1"].astype(jnp.float32).reshape(H, 1)
    b2 = params["b2"].astype(jnp.float32).reshape(H, 1)
    w3t = params["w3"].astype(jnp.float32).reshape(1, H).T         # (H, 1)
    b3 = params["b3"].astype(jnp.float32).reshape(1, 1)

    const = lambda i: (0, 0)
    cost = pl.CostEstimate(
        flops=2 * B_pad * (F * H + H * H + H),
        transcendentals=0,
        bytes_accessed=4 * (B_pad * F + H * F + H * H + 3 * H + 1 + B_pad),
    )

    out = pl.pallas_call(
        _mlp3_kernel,
        out_shape=jax.ShapeDtypeStruct((1, B_pad), jnp.float32),
        grid=(ntiles,),
        in_specs=[
            # stream TB rows of x per grid step (double-buffered by Pallas)
            pl.BlockSpec((TB, F), lambda i: (i, 0)),
            # params: constant block index -> DMA'd once, resident in VMEM
            pl.BlockSpec((H, F), const),
            pl.BlockSpec((H, H), const),
            pl.BlockSpec((H, 1), const),
            pl.BlockSpec((H, 1), const),
            pl.BlockSpec((H, 1), const),
            pl.BlockSpec((1, 1), const),
        ],
        # lane-dense output slab: step i writes lanes [i*TB, (i+1)*TB)
        out_specs=pl.BlockSpec((1, TB), lambda i: (0, i)),
        compiler_params=pltpu.CompilerParams(
            dimension_semantics=("parallel",)),       # lets v7x's 2 TCs split the batch
        cost_estimate=cost,
    )(x2d, w1, w2, b1, b2, w3t, b3)

    return out[0, :B].reshape(B, 1)


def init_params(key, in_features, hidden_dim):
    """nn.Linear-style init, native torch layouts: w (out, in), b (out,)."""
    ks = jax.random.split(key, 6)

    def lin(kw, kb, fan_in, fan_out):
        bound = 1.0 / np.sqrt(fan_in)
        w = jax.random.uniform(kw, (fan_out, fan_in), jnp.float32, -bound, bound)
        b = jax.random.uniform(kb, (fan_out,), jnp.float32, -bound, bound)
        return w, b

    w1, b1 = lin(ks[0], ks[1], in_features, hidden_dim)
    w2, b2 = lin(ks[2], ks[3], hidden_dim, hidden_dim)
    w3, b3 = lin(ks[4], ks[5], hidden_dim, 1)
    return {"w1": w1, "b1": b1, "w2": w2, "b2": b2, "w3": w3, "b3": b3}


def _reference(x, p):
    B = x.shape[0]
    h = x.reshape(B, -1)
    h = jnp.maximum(h @ p["w1"].T + p["b1"], 0.0)
    h = jnp.maximum(h @ p["w2"].T + p["b2"], 0.0)
    return (h @ p["w3"].T + p["b3"]).reshape(-1, 1)


if __name__ == "__main__":
    key = jax.random.PRNGKey(0)
    kx, kp, kx2 = jax.random.split(key, 3)

    # input_size_x_feature = (4, 16) -> flattened feature size 64, hidden_dim = 32
    feat_dims, hidden_dim = (4, 16), 32
    params = init_params(kp, int(np.prod(feat_dims)), hidden_dim)

    # Primary: small batch -> pads 200 -> 256, single grid step (overhead-minimal path).
    fwd = jax.jit(functools.partial(layer3fc_forward, tb=1024))
    x = jax.random.normal(kx, (200,) + feat_dims, dtype=jnp.float32)
    y = jax.block_until_ready(fwd(x, params))
    y_ref = _reference(x, params)
    assert y.shape == (200, 1)
    np.testing.assert_allclose(np.asarray(y), np.asarray(y_ref), rtol=1e-5, atol=2e-5)

    # Secondary: force multi-tile path (B=300 -> B_pad=384, TB=128, 3 grid steps) to
    # exercise batch tiling + padded-row slice-off.
    fwd_small_tile = jax.jit(functools.partial(layer3fc_forward, tb=128))
    x2 = jax.random.normal(kx2, (300,) + feat_dims, dtype=jnp.float32)
    y2 = jax.block_until_ready(fwd_small_tile(x2, params))
    y2_ref = _reference(x2, params)
    assert y2.shape == (300, 1)
    np.testing.assert_allclose(np.asarray(y2), np.asarray(y2_ref), rtol=1e-5, atol=2e-5)

    print("KERNEL_OK")
</pallas_src>

<mosaic_0001>
module attributes {stable_mosaic.version = 11 : i64} {
  func.func @_mlp3_kernel(%arg0: i32, %arg1: memref<256x64xf32, #tpu.memory_space<vmem>>, %arg2: memref<32x64xf32, #tpu.memory_space<vmem>>, %arg3: memref<32x32xf32, #tpu.memory_space<vmem>>, %arg4: memref<32x1xf32, #tpu.memory_space<vmem>>, %arg5: memref<32x1xf32, #tpu.memory_space<vmem>>, %arg6: memref<32x1xf32, #tpu.memory_space<vmem>>, %arg7: memref<1x1xf32, #tpu.memory_space<vmem>>, %arg8: memref<1x256xf32, #tpu.memory_space<vmem>>) attributes {dimension_semantics = [#tpu.dimension_semantics<parallel>], iteration_bounds = array<i64: 1>, scalar_prefetch = 0 : i64, scratch_operands = 0 : i64, tpu.core_type = #tpu.core_type<tc>, window_params = [{transform_indices = @transform_0, window_bounds = array<i64: 256, 64>}, {pipeline_mode = #tpu.pipeline_mode<synchronous>, transform_indices = @transform_1, window_bounds = array<i64: 32, 64>}, {pipeline_mode = #tpu.pipeline_mode<synchronous>, transform_indices = @transform_2, window_bounds = array<i64: 32, 32>}, {pipeline_mode = #tpu.pipeline_mode<synchronous>, transform_indices = @transform_3, window_bounds = array<i64: 32, 1>}, {pipeline_mode = #tpu.pipeline_mode<synchronous>, transform_indices = @transform_4, window_bounds = array<i64: 32, 1>}, {pipeline_mode = #tpu.pipeline_mode<synchronous>, transform_indices = @transform_5, window_bounds = array<i64: 32, 1>}, {pipeline_mode = #tpu.pipeline_mode<synchronous>, transform_indices = @transform_6, window_bounds = array<i64: 1, 1>}, {transform_indices = @transform_7, window_bounds = array<i64: 1, 256>}]} {
    %c0 = arith.constant 0 : index
    %c0_0 = arith.constant 0 : index
    %0 = vector.load %arg1[%c0, %c0_0] : memref<256x64xf32, #tpu.memory_space<vmem>>, vector<256x64xf32>
    %c0_1 = arith.constant 0 : index
    %c0_2 = arith.constant 0 : index
    %1 = vector.load %arg2[%c0_1, %c0_2] : memref<32x64xf32, #tpu.memory_space<vmem>>, vector<32x64xf32>
    %c0_3 = arith.constant 0 : index
    %c0_4 = arith.constant 0 : index
    %2 = vector.load %arg3[%c0_3, %c0_4] : memref<32x32xf32, #tpu.memory_space<vmem>>, vector<32x32xf32>
    %c0_5 = arith.constant 0 : index
    %c0_6 = arith.constant 0 : index
    %3 = vector.load %arg4[%c0_5, %c0_6] : memref<32x1xf32, #tpu.memory_space<vmem>>, vector<32x1xf32>
    %c0_7 = arith.constant 0 : index
    %c0_8 = arith.constant 0 : index
    %4 = vector.load %arg5[%c0_7, %c0_8] : memref<32x1xf32, #tpu.memory_space<vmem>>, vector<32x1xf32>
    %c0_9 = arith.constant 0 : index
    %c0_10 = arith.constant 0 : index
    %5 = vector.load %arg6[%c0_9, %c0_10] : memref<32x1xf32, #tpu.memory_space<vmem>>, vector<32x1xf32>
    %c0_11 = arith.constant 0 : index
    %c0_12 = arith.constant 0 : index
    %6 = vector.load %arg7[%c0_11, %c0_12] : memref<1x1xf32, #tpu.memory_space<vmem>>, vector<1x1xf32>
    %cst = arith.constant dense<0.000000e+00> : vector<32x256xf32>
    %7 = tpu.matmul %1, %0, %cst {dimension_numbers = #tpu.dot_dimension_numbers<[1], [1], [0], [0], [0, 0, 1, 0], [], []>} : vector<32x64xf32>, vector<256x64xf32>, vector<32x256xf32> -> vector<32x256xf32>
    %8 = vector.broadcast %3 : vector<32x1xf32> to vector<32x256xf32>
    %9 = arith.addf %7, %8 : vector<32x256xf32>
    %cst_13 = arith.constant 0.000000e+00 : f32
    %10 = vector.broadcast %cst_13 : f32 to vector<32x256xf32>
    %11 = arith.maximumf %9, %10 : vector<32x256xf32>
    %cst_14 = arith.constant dense<0.000000e+00> : vector<32x256xf32>
    %12 = tpu.matmul %2, %11, %cst_14 {dimension_numbers = #tpu.dot_dimension_numbers<[1], [0], [0], [1], [0, 0, 1, 1], [], []>} : vector<32x32xf32>, vector<32x256xf32>, vector<32x256xf32> -> vector<32x256xf32>
    %13 = vector.broadcast %4 : vector<32x1xf32> to vector<32x256xf32>
    %14 = arith.addf %12, %13 : vector<32x256xf32>
    %cst_15 = arith.constant 0.000000e+00 : f32
    %15 = vector.broadcast %cst_15 : f32 to vector<32x256xf32>
    %16 = arith.maximumf %14, %15 : vector<32x256xf32>
    %17 = vector.broadcast %5 : vector<32x1xf32> to vector<32x256xf32>
    %18 = arith.mulf %16, %17 : vector<32x256xf32>
    %cst_16 = arith.constant dense<0.000000e+00> : vector<256xf32>
    %19 = vector.multi_reduction <add>, %18, %cst_16 [0] : vector<32x256xf32> to vector<256xf32>
    %20 = vector.shape_cast %19 : vector<256xf32> to vector<1x256xf32>
    %21 = vector.broadcast %6 : vector<1x1xf32> to vector<1x256xf32>
    %22 = arith.addf %20, %21 : vector<1x256xf32>
    %c0_17 = arith.constant 0 : index
    %c0_18 = arith.constant 0 : index
    %23 = vector.load %arg8[%c0_17, %c0_18] : memref<1x256xf32, #tpu.memory_space<vmem>>, vector<1x256xf32>
    tpu.vector_store %arg8[%c0_17, %c0_18], %22 {strides = array<i32>} : memref<1x256xf32, #tpu.memory_space<vmem>>, vector<1x256xf32>,
    return
  }
  func.func @transform_0(%arg0: i32) -> (i32, i32) {
    %c0_i32 = arith.constant 0 : i32
    %c0_i32_0 = arith.constant 0 : i32
    return %arg0, %c0_i32 : i32, i32
  }
  func.func @transform_1(%arg0: i32) -> (i32, i32) {
    %c0_i32 = arith.constant 0 : i32
    %c0_i32_0 = arith.constant 0 : i32
    %c0_i32_1 = arith.constant 0 : i32
    return %c0_i32, %c0_i32_0 : i32, i32
  }
  func.func @transform_2(%arg0: i32) -> (i32, i32) {
    %c0_i32 = arith.constant 0 : i32
    %c0_i32_0 = arith.constant 0 : i32
    %c0_i32_1 = arith.constant 0 : i32
    return %c0_i32, %c0_i32_0 : i32, i32
  }
  func.func @transform_3(%arg0: i32) -> (i32, i32) {
    %c0_i32 = arith.constant 0 : i32
    %c0_i32_0 = arith.constant 0 : i32
    %c0_i32_1 = arith.constant 0 : i32
    return %c0_i32, %c0_i32_0 : i32, i32
  }
  func.func @transform_4(%arg0: i32) -> (i32, i32) {
    %c0_i32 = arith.constant 0 : i32
    %c0_i32_0 = arith.constant 0 : i32
    %c0_i32_1 = arith.constant 0 : i32
    return %c0_i32, %c0_i32_0 : i32, i32
  }
  func.func @transform_5(%arg0: i32) -> (i32, i32) {
    %c0_i32 = arith.constant 0 : i32
    %c0_i32_0 = arith.constant 0 : i32
    %c0_i32_1 = arith.constant 0 : i32
    return %c0_i32, %c0_i32_0 : i32, i32
  }
  func.func @transform_6(%arg0: i32) -> (i32, i32) {
    %c0_i32 = arith.constant 0 : i32
    %c0_i32_0 = arith.constant 0 : i32
    %c0_i32_1 = arith.constant 0 : i32
    return %c0_i32, %c0_i32_0 : i32, i32
  }
  func.func @transform_7(%arg0: i32) -> (i32, i32) {
    %c0_i32 = arith.constant 0 : i32
    %c0_i32_0 = arith.constant 0 : i32
    return %c0_i32, %arg0 : i32, i32
  }
}

</mosaic_0001>

<bundles_post_ra>
// kernel: layer3fc_forward.1
= control target key start
LH: loop header
LB: loop body
LE: loop exit
PB: predicated region body
PF: predicated region fallthrough
CT: control target
= control target key end

     0   :  { %vm101_vm0 = vcmask 523264   ;;  %v606_v3 = vmov 0   ;;  %v607_v51 = vmov 0.0   ;;  %vm327_vm1 = vcmask 261120   ;;  %s855_s0 = inlined_call_operand.vmem [shape: f32[256,64], index: 0, kind: input, shape index: {}]   ;;  %s856_s6 = inlined_call_operand.<no memory space> [shape: f32[1,1], index: 6, kind: input, shape index: {}]   ;;  %s857_s1 = inlined_call_operand.vmem [shape: f32[32,64], index: 1, kind: input, shape index: {}]   ;;  %s858_s3 = inlined_call_operand.vmem [shape: f32[32,1], index: 3, kind: input, shape index: {}]   ;;  %s859_s4 = inlined_call_operand.vmem [shape: f32[32,1], index: 4, kind: input, shape index: {}]   ;;  %s860_s5 = inlined_call_operand.vmem [shape: f32[32,1], index: 5, kind: input, shape index: {}]   ;;  %s861_s2 = inlined_call_operand.vmem [shape: f32[32,32], index: 2, kind: input, shape index: {}]   ;;  %s862_s7 = inlined_call_operand.vmem [shape: f32[1,256], index: 7, kind: output, shape index: {}]  }
   0x1   :  { %v59_v0 = vld [vmem:[%s855_s0 + $0xf8] sm:$0xff]  ;;  %v58_v2 = vld [vmem:[%s855_s0 + $0xf0] sm:$0xff]  ;;  %604 = vset.pattern.permute.xlu0 %v606_v3  ;;  %605 = vset.pattern.permute.xlu1 %v606_v3  ;;  %v12_v4 = vstv %s856_s6  ;;  %v57_v6 = vld [vmem:[%s855_s0 + $0xe8] sm:$0xff] }
   0x2   :  { %v43_v1 = vld [vmem:[%s855_s0 + $0x78] sm:$0xff]  ;;  %561 = vmatprep.subr.msk.mxu0 %vm101_vm0, %v59_v0  ;;  %13 = vst [vmem:[#allocation2] sm:$0x1] %v12_v4  ;;  %v42_v5 = vld [vmem:[%s855_s0 + $0x70] sm:$0xff]  ;;  %v41_v7 = vld [vmem:[%s855_s0 + $0x68] sm:$0xff]  ;;  %404 = vmatprep.mubr.f32.mxu1 %v607_v51 }
   0x3   :  { %562 = vmatpush3.xpose.msk.msra.mxu0 %vm101_vm0, %v43_v1  ;;  %v56_v8 = vld [vmem:[%s855_s0 + $0xe0] sm:$0xff]  ;;  %v55_v11 = vld [vmem:[%s855_s0 + $0xd8] sm:$0xff]  ;;  %v69_v13 = vld [vmem:[%s858_s3 + $0x8] sm:$0xff] }
   0x4   :  { %563 = vmatprep.subr.msk.mxu0 %vm101_vm0, %v58_v2  ;;  %v682_v9 = vld [vmem:[%s857_s1] sm:$0xff]  ;;  %v71_v12 = vld [vmem:[%s858_s3 + $0x18] sm:$0xff]  ;;  %v70_v14 = vld [vmem:[%s858_s3 + $0x10] sm:$0xff]  ;;  %88 = vperm.xlu1 %605, %v69_v13  }
   0x5   :  { %v40_v10 = vld [vmem:[%s855_s0 + $0x60] sm:$0xff]  ;;  %593 = vmatprep.mubr.msk.f32.mxu0 %vm101_vm0, %v682_v9  ;;  %98 = vperm.xlu0 %604, %v71_v12   ;;  %v39_v15 = vld [vmem:[%s855_s0 + $0x58] sm:$0xff]  ;;  %v54_v17 = vld [vmem:[%s855_s0 + $0xd0] sm:$0xff] }
   0x6   :  { %v68_v16 = vld [vmem:[%s858_s3] sm:$0xff]  ;;  %v38_v19 = vld [vmem:[%s855_s0 + $0x50] sm:$0xff]  ;;  %v73_v20 = vld [vmem:[%s859_s4 + $0x8] sm:$0xff] }
   0x7   :  { %564 = vmatpush3.xpose.msk.msra.mxu0 %vm101_vm0, %v42_v5  ;;  %v72_v18 = vld [vmem:[%s859_s4] sm:$0xff]  ;;  %v53_v21 = vld [vmem:[%s855_s0 + $0xc8] sm:$0xff]  ;;  %v74_v22 = vld [vmem:[%s859_s4 + $0x10] sm:$0xff] }
   0x8   :  { %565 = vmatprep.subr.msk.mxu0 %vm101_vm0, %v57_v6  ;;  %83 = vperm.xlu1 %605, %v68_v16   ;;  %v37_v23 = vld [vmem:[%s855_s0 + $0x48] sm:$0xff]  ;;  %v75_v24 = vld [vmem:[%s859_s4 + $0x18] sm:$0xff]  ;;  %v52_v25 = vld [vmem:[%s855_s0 + $0xc0] sm:$0xff] }
   0x9   :  { %93 = vperm.xlu0 %604, %v70_v14   ;;  %v76_v26 = vld [vmem:[%s860_s5] sm:$0xff]  ;;  %v77_v28 = vld [vmem:[%s860_s5 + $0x8] sm:$0xff]  ;;  %v51_v29 = vld [vmem:[%s855_s0 + $0xb8] sm:$0xff] }
   0xa   :  { %v36_v27 = vld [vmem:[%s855_s0 + $0x40] sm:$0xff]  ;;  %v78_v30 = vld [vmem:[%s860_s5 + $0x10] sm:$0xff]  ;;  %v35_v31 = vld [vmem:[%s855_s0 + $0x38] sm:$0xff] }
   0xb   :  { %566 = vmatpush3.xpose.msk.msra.mxu0 %vm101_vm0, %v41_v7  ;;  %v79_v32 = vld [vmem:[%s860_s5 + $0x18] sm:$0xff]  ;;  %v50_v33 = vld [vmem:[%s855_s0 + $0xb0] sm:$0xff]  ;;  %v80_v34 = vld [vmem:[#allocation2] sm:$0x1] }
   0xc   :  { %567 = vmatprep.subr.msk.mxu0 %vm101_vm0, %v56_v8  ;;  %314 = vperm.xlu1 %605, %v73_v20   ;;  %v34_v35 = vld [vmem:[%s855_s0 + $0x30] sm:$0xff]  ;;  %v49_v36 = vld [vmem:[%s855_s0 + $0xa8] sm:$0xff]  ;;  %v48_v38 = vld [vmem:[%s855_s0 + $0xa0] sm:$0xff] }
   0xd   :  { %309 = vperm.xlu0 %604, %v72_v18   ;;  %v33_v37 = vld [vmem:[%s855_s0 + $0x28] sm:$0xff]  ;;  %v32_v39 = vld [vmem:[%s855_s0 + $0x20] sm:$0xff]  ;;  %v47_v40 = vld [vmem:[%s855_s0 + $0x98] sm:$0xff] }
   0xe   :  { %v31_v41 = vld [vmem:[%s855_s0 + $0x18] sm:$0xff]  ;;  %v46_v42 = vld [vmem:[%s855_s0 + $0x90] sm:$0xff]  ;;  %v45_v44 = vld [vmem:[%s855_s0 + $0x88] sm:$0xff] }
   0xf   :  { %568 = vmatpush3.xpose.msk.msra.mxu0 %vm101_vm0, %v40_v10  ;;  %v30_v43 = vld [vmem:[%s855_s0 + $0x10] sm:$0xff]  ;;  %v29_v45 = vld [vmem:[%s855_s0 + $0x8] sm:$0xff]  ;;  %v44_v46 = vld [vmem:[%s855_s0 + $0x80] sm:$0xff] }
  0x10   :  { %569 = vmatprep.subr.msk.mxu0 %vm101_vm0, %v55_v11  ;;  %324 = vperm.xlu1 %605, %v75_v24   ;;  %v28_v47 = vld [vmem:[%s855_s0] sm:$0xff]  ;;  %v61_v48 = vld [vmem:[%s857_s1 + $0x8] sm:$0xff]  ;;  %v62_v49 = vld [vmem:[%s857_s1 + $0x10] sm:$0xff] }
  0x11   :  { %319 = vperm.xlu0 %604, %v74_v22   ;;  %v63_v50 = vld [vmem:[%s857_s1 + $0x18] sm:$0xff]  ;;  %v64_v16 = vld [vmem:[%s861_s2] sm:$0xff]  ;;  %v66_v18 = vld [vmem:[%s861_s2 + $0x10] sm:$0xff] }
  0x13   :  { %570 = vmatpush3.xpose.msk.msra.mxu0 %vm101_vm0, %v39_v15 }
  0x14   :  { %571 = vmatprep.subr.msk.mxu0 %vm101_vm0, %v54_v17  ;;  %444 = vperm.xlu1 %605, %v77_v28   ;;  %v65_v17 = vld [vmem:[%s861_s2 + $0x8] sm:$0xff] }
  0x15   :  { %439 = vperm.xlu0 %604, %v76_v26  }
  0x17   :  { %572 = vmatpush3.xpose.msk.msra.mxu0 %vm101_vm0, %v38_v19  ;;  %v67_v19 = vld [vmem:[%s861_s2 + $0x18] sm:$0xff] }
  0x18   :  { %573 = vmatprep.subr.msk.mxu0 %vm101_vm0, %v53_v21  ;;  %454 = vperm.xlu1 %605, %v79_v32  }
  0x19   :  { %449 = vperm.xlu0 %604, %v78_v30  }
  0x1b   :  { %574 = vmatpush3.xpose.msk.msra.mxu0 %vm101_vm0, %v37_v23 }
  0x1c   :  { %575 = vmatprep.subr.msk.mxu0 %vm101_vm0, %v52_v25 }
  0x1d   :  { %485 = vperm.xlu0 %604, %v80_v34  }
  0x1f   :  { %576 = vmatpush3.xpose.msk.msra.mxu0 %vm101_vm0, %v36_v27 }
  0x20   :  { %577 = vmatprep.subr.msk.mxu0 %vm101_vm0, %v51_v29 }
  0x23   :  { %578 = vmatpush3.xpose.msk.msra.mxu0 %vm101_vm0, %v35_v31 }
  0x24   :  { %579 = vmatprep.subr.msk.mxu0 %vm101_vm0, %v50_v33 }
  0x27   :  { %580 = vmatpush3.xpose.msk.msra.mxu0 %vm101_vm0, %v34_v35 }
  0x28   :  { %581 = vmatprep.subr.msk.mxu0 %vm101_vm0, %v49_v36 }
  0x2b   :  { %582 = vmatpush3.xpose.msk.msra.mxu0 %vm101_vm0, %v33_v37 }
  0x2c   :  { %583 = vmatprep.subr.msk.mxu0 %vm101_vm0, %v48_v38 }
  0x2f   :  { %584 = vmatpush3.xpose.msk.msra.mxu0 %vm101_vm0, %v32_v39 }
  0x30   :  { %585 = vmatprep.subr.msk.mxu0 %vm101_vm0, %v47_v40 }
  0x33   :  { %586 = vmatpush3.xpose.msk.msra.mxu0 %vm101_vm0, %v31_v41 }
  0x34   :  { %587 = vmatprep.subr.msk.mxu0 %vm101_vm0, %v46_v42 }
  0x37   :  { %588 = vmatpush3.xpose.msk.msra.mxu0 %vm101_vm0, %v30_v43 }
  0x38   :  { %589 = vmatprep.subr.msk.mxu0 %vm101_vm0, %v45_v44 }
  0x3b   :  { %590 = vmatpush3.xpose.msk.msra.mxu0 %vm101_vm0, %v29_v45 }
  0x3c   :  { %591 = vmatprep.subr.msk.mxu0 %vm101_vm0, %v44_v46 }
  0x3f   :  { %592 = vmatpush3.xpose.msk.msra.mxu0 %vm101_vm0, %v28_v47 }
  0x42   :  { %594 = vmatmul.mubr.msk.f32.vlgmr.msra.gmra.mxu0 %vm101_vm0, %v682_v9 }
  0x43   :  { %595 = vmatprep.mubr.msk.f32.mxu0 %vm101_vm0, %v61_v48 }
  0x46   :  { %596 = vmatmul.mubr.msk.f32.gmra.mxu0 %vm101_vm0, %v61_v48 }
  0x47   :  { %597 = vmatprep.mubr.msk.f32.mxu0 %vm101_vm0, %v62_v49 }
  0x4a   :  { %598 = vmatmul.mubr.msk.f32.gmra.mxu0 %vm101_vm0, %v62_v49 }
  0x4b   :  { %599 = vmatprep.mubr.msk.f32.mxu0 %vm101_vm0, %v63_v50 }
  0x4e   :  { %600 = vmatmul.mubr.msk.f32.gmra.mxu0 %vm101_vm0, %v63_v50 }
  0x7f   :  { %v89_v59 = vpop.permute.xlu1 %88 }
  0x80   :  { %v99_v56 = vpop.permute.xlu0 %98 }
  0x83   :  { %v84_v3 = vpop.permute.xlu1 %83 }
  0x84   :  { %v94_v61 = vpop.permute.xlu0 %93 }
  0x87   :  { %v315_v21 = vpop.permute.xlu1 %314 }
  0x88   :  { %v310_v20 = vpop.permute.xlu0 %309 }
  0x8b   :  { %v325_v25 = vpop.permute.xlu1 %324 }
  0x8c   :  { %v320_v22 = vpop.permute.xlu0 %319 }
  0x8f   :  { %v445_v38 = vpop.permute.xlu1 %444 }
  0x90   :  { %v440_v29 = vpop.permute.xlu0 %439 }
  0x94   :  { %v450_v44 = vpop.permute.xlu0 %449 }
 0x102   :  { %v276_v52 = vpop.f32.mrf.mxu0 }
 0x103   :  { %v277_v10 = vadd.f32 %v276_v52, %v84_v3 }
 0x104   :  { %v278_v53 = vpop.f32.mrf.mxu0 }
 0x105   :  { %v279_v8 = vadd.f32 %v278_v53, %v84_v3  ;;  %v299_v15 = vmax.f32 %v277_v10, 0.0 }
 0x106   :  { %v282_v54 = vpop.f32.mrf.mxu0 }
 0x107   :  { %v283_v6 = vadd.f32 %v282_v54, %v89_v59  ;;  %v300_v14 = vmax.f32 %v279_v8, 0.0 }
 0x108   :  { %v284_v55 = vpop.f32.mrf.mxu0 }
 0x109   :  { %v285_v4 = vadd.f32 %v284_v55, %v89_v59  ;;  %v301_v13 = vmax.f32 %v283_v6, 0.0 }
 0x10a   :  { %v288_v57 = vpop.f32.mrf.mxu0 }
 0x10b   :  { %v289_v2 = vadd.f32 %v288_v57, %v94_v61  ;;  %v302_v12 = vmax.f32 %v285_v4, 0.0  ;;  %v455_v57 = vpop.permute.xlu1 %454 }
 0x10c   :  { %v290_v58 = vpop.f32.mrf.mxu0 }
 0x10d   :  { %v291_v0 = vadd.f32 %v290_v58, %v94_v61  ;;  %v303_v11 = vmax.f32 %v289_v2, 0.0 }
 0x10e   :  { %v294_v60 = vpop.f32.mrf.mxu0 }
 0x10f   :  { %v295_v62 = vadd.f32 %v294_v60, %v99_v56  ;;  %v304_v9 = vmax.f32 %v291_v0, 0.0 }
 0x110   :  { %v296_v63 = vpop.f32.mrf.mxu0 }
 0x111   :  { %v297_v1 = vadd.f32 %v296_v63, %v99_v56  ;;  %v305_v7 = vmax.f32 %v295_v62, 0.0 }
 0x113   :  { %v306_v5 = vmax.f32 %v297_v1, 0.0  ;;  %v488_v1 = vlaneseq }
 0x115   :  { %364 = vmatprep.subr.mxu1 %v306_v5  ;;  %v489_v6 = vshrl.u32 %v488_v1, 7  ;;  %vm514_vm2 = vcmp.lt.s32.totalorder %v488_v1, 256 }
 0x116   :  { %365 = vmatpush1.msra.mxu1 %v305_v7 }
 0x117   :  { %366 = vmatprep.subr.mxu1 %v304_v9  ;;  %v608_v9 = vmov 1966171168  }
 0x118   :  { %367 = vmatpush1.msra.mxu1 %v303_v11  ;;  %v498_v10 = vunpack.c.l.s4 %v608_v9 }
 0x119   :  { %368 = vmatprep.subr.mxu1 %v302_v12 }
 0x11a   :  { %369 = vmatpush1.msra.mxu1 %v301_v13  ;;  %v490_v13 = vsub.s32 0, %v489_v6 }
 0x11b   :  { %370 = vmatprep.subr.mxu1 %v300_v14 }
 0x11c   :  { %371 = vmatpush1.msra.mxu1 %v299_v15 }
 0x11d   :  { %557 = vmatmul.mubr.msk.f32.vlgmr.msra.gmra.mxu1 %vm327_vm1, %v64_v16  ;;  %v486_v16 = vpop.permute.xlu0 %485 }
 0x11e   :  { %410 = vmatprep.mubr.f32.mxu1 %v607_v51 }
 0x121   :  { %558 = vmatmul.mubr.msk.f32.gmra.mxu1 %vm327_vm1, %v65_v17  ;;  %v499_v17 = vunpack.c.0.s8 %v498_v10 }
 0x122   :  { %416 = vmatprep.mubr.f32.mxu1 %v607_v51 }
 0x125   :  { %559 = vmatmul.mubr.msk.f32.gmra.mxu1 %vm327_vm1, %v66_v18 }
 0x126   :  { %422 = vmatprep.mubr.f32.mxu1 %v607_v51 }
 0x129   :  { %560 = vmatmul.mubr.msk.f32.gmra.mxu1 %vm327_vm1, %v67_v19 }
 0x1dd   :  { %v406_v23 = vpop.f32.mrf.mxu1 }
 0x1de   :  { %v407_v26 = vadd.f32 %v406_v23, %v310_v20 }
 0x1df   :  { %v408_v24 = vpop.f32.mrf.mxu1 }
 0x1e0   :  { %v409_v30 = vadd.f32 %v408_v24, %v310_v20  ;;  %v429_v34 = vmax.f32 %v407_v26, 0.0  ;;  %v491_v20 = vrot.slane %v486_v16, %v490_v13 }
 0x1e1   :  { %v412_v27 = vpop.f32.mrf.mxu1 }
 0x1e2   :  { %v413_v28 = vadd.f32 %v412_v27, %v315_v21  ;;  %v430_v39 = vmax.f32 %v409_v30, 0.0  ;;  %v457_v45 = vmul.f32 %v440_v29, %v429_v34 }
 0x1e3   :  { %v414_v31 = vpop.f32.mrf.mxu1 }
 0x1e4   :  { %v431_v32 = vmax.f32 %v413_v28, 0.0  ;;  %v415_v33 = vadd.f32 %v414_v31, %v315_v21  ;;  %v458_v51 = vmul.f32 %v440_v29, %v430_v39 }
 0x1e5   :  { %v418_v35 = vpop.f32.mrf.mxu1 }
 0x1e6   :  { %v432_v36 = vmax.f32 %v415_v33, 0.0  ;;  %v419_v37 = vadd.f32 %v418_v35, %v320_v22  ;;  %v459_v41 = vmul.f32 %v445_v38, %v431_v32 }
 0x1e7   :  { %v420_v40 = vpop.f32.mrf.mxu1 }
 0x1e8   :  { %v433_v42 = vmax.f32 %v419_v37, 0.0  ;;  %v421_v43 = vadd.f32 %v420_v40, %v320_v22  ;;  %v460_v47 = vmul.f32 %v445_v38, %v432_v36  ;;  %v465_v53 = vadd.f32 %v459_v41, %v457_v45 }
 0x1e9   :  { %v424_v46 = vpop.f32.mrf.mxu1  ;;  %v502_v22 = vsub.s32 %v499_v17, %v489_v6 }
 0x1ea   :  { %v461_v48 = vmul.f32 %v450_v44, %v433_v42  ;;  %v434_v49 = vmax.f32 %v421_v43, 0.0  ;;  %v425_v50 = vadd.f32 %v424_v46, %v325_v25  ;;  %v474_v58 = vadd.f32 %v460_v47, %v458_v51 }
 0x1eb   :  { %v426_v52 = vpop.f32.mrf.mxu1 }
 0x1ec   :  { %v462_v54 = vmul.f32 %v450_v44, %v434_v49  ;;  %v435_v55 = vmax.f32 %v425_v50, 0.0  ;;  %v427_v56 = vadd.f32 %v426_v52, %v325_v25  ;;  %v466_v59 = vadd.f32 %v465_v53, %v461_v48 }
 0x1ee   :  { %v463_v60 = vmul.f32 %v455_v57, %v435_v55  ;;  %v436_v61 = vmax.f32 %v427_v56, 0.0  ;;  %v475_v62 = vadd.f32 %v474_v58, %v462_v54 }
 0x1f0   :  { %v467_v63 = vadd.f32 %v466_v59, %v463_v60  ;;  %v464_v0 = vmul.f32 %v455_v57, %v436_v61 }
 0x1f2   :  { %v468_v2 = vrot.slane %v467_v63, 4  ;;  %v476_v3 = vadd.f32 %v475_v62, %v464_v0 }
 0x1f4   :  { %v469_v4 = vadd.f32 %v468_v2, %v467_v63  ;;  %v477_v5 = vrot.slane %v476_v3, 4 }
 0x1f6   :  { %v470_v7 = vrot.slane %v469_v4, 2  ;;  %v478_v8 = vadd.f32 %v477_v5, %v476_v3 }
 0x1f8   :  { %v471_v11 = vadd.f32 %v470_v7, %v469_v4  ;;  %v479_v12 = vrot.slane %v478_v8, 2 }
 0x1fa   :  { %v472_v14 = vrot.slane %v471_v11, 1  ;;  %v480_v15 = vadd.f32 %v479_v12, %v478_v8 }
 0x1fc   :  { %v473_v18 = vadd.f32 %v472_v14, %v471_v11  ;;  %v481_v19 = vrot.slane %v480_v15, 1 }
 0x1fe   :  { %v482_v21 = vadd.f32 %v481_v19, %v480_v15  ;;  %v492_v23 = vadd.f32 %v491_v20, %v473_v18 }
 0x200   :  { %v493_v24 = vadd.f32 %v491_v20, %v482_v21 }
 0x202   :  { %v496_v25 = vcombine.low %v492_v23, %v493_v24 }
 0x204   :  { %v503_v26 = vrot.slane %v496_v25, %v502_v22 }
 0x206   :  { %v510_v27 = vrot.slane %v503_v26, %v502_v22 }
 0x208   :  { %516 = vst.msk [vmem:[%s862_s7] sm:$0x3] %vm514_vm2, %v510_v27 }

</bundles_post_ra>
